<compile_context>
chip_gen: v7x
topology: tpu7x:2x2x1
jax: 0.10.0
libtpu: 0.0.40
codegen_flags: <defaults>
</compile_context>

<pallas_src>
import functools

import numpy as np
import jax
import jax.numpy as jnp
from jax.experimental import pallas as pl
from jax.experimental.pallas import tpu as pltpu


def _round_down(v, q):
    return (v // q) * q


def _minmax_partial_kernel(x_ref, pmax_ref, pmin_ref, max_acc, min_acc, *,
                           rows_total, tiles_per_slice, needs_mask):
    """Per-slice running max/min over row blocks.

    x_ref    : (tile_r, C) input block, native dtype (VMEM)
    pmax_ref : (1, 1, 1) f32 partial max for this slice (written at last step)
    pmin_ref : (1, 1, 1) f32 partial min for this slice (written at last step)
    max_acc  : (8, C) f32 VMEM accumulator (persists across the reduction axis)
    min_acc  : (8, C) f32 VMEM accumulator
    """
    p = pl.program_id(0)          # parallel slice (v7x: one per TensorCore)
    s = pl.program_id(1)          # sequential reduction step within the slice
    last = pl.num_programs(1) - 1

    @pl.when(s == 0)
    def _init():
        max_acc[...] = jnp.full(max_acc.shape, -jnp.inf, jnp.float32)
        min_acc[...] = jnp.full(min_acc.shape, jnp.inf, jnp.float32)

    # Stream native dtype from HBM; do the math in f32 (VMEM-resident cast,
    # also keeps v5e's f32-only VPU happy).
    x = x_ref[...].astype(jnp.float32)
    tile_r, ncol = x.shape

    if needs_mask:
        # Mask rows past the logical end of the array (ragged last block and
        # any phantom block introduced by the 2-way slice split).
        nominal_block = p * tiles_per_slice + s
        row0 = nominal_block * tile_r
        rid = row0 + jax.lax.broadcasted_iota(jnp.int32, x.shape, 0)
        valid = rid < rows_total
        x_for_max = jnp.where(valid, x, -jnp.inf)
        x_for_min = jnp.where(valid, x, jnp.inf)
    else:
        x_for_max = x
        x_for_min = x

    if tile_r % 8 == 0:
        # Axis-0-first reduce: (tile_r, C) -> (tile_r//8, 8, C) -> (8, C).
        # Pure cross-vreg VALU vmax/vmin; no per-tile XLU work.
        x3_max = x_for_max.reshape(tile_r // 8, 8, ncol)
        x3_min = x_for_min.reshape(tile_r // 8, 8, ncol)
        part_max = jnp.max(x3_max, axis=0)
        part_min = jnp.min(x3_min, axis=0)
    else:
        # Tiny-array fallback (whole input has fewer rows than one sublane
        # group); (1, C) broadcasts into the (8, C) accumulator.
        part_max = jnp.max(x_for_max, axis=0, keepdims=True)
        part_min = jnp.min(x_for_min, axis=0, keepdims=True)

    max_acc[...] = jnp.maximum(max_acc[...], part_max)
    min_acc[...] = jnp.minimum(min_acc[...], part_min)

    @pl.when(s == last)
    def _finalize():
        # Single deferred cross-lane / cross-sublane (XLU) reduction per slice.
        gmax = jnp.max(jnp.max(max_acc[...], axis=1, keepdims=True),
                       axis=0, keepdims=True)
        gmin = jnp.min(jnp.min(min_acc[...], axis=1, keepdims=True),
                       axis=0, keepdims=True)
        pmax_ref[...] = gmax.reshape(1, 1, 1)
        pmin_ref[...] = gmin.reshape(1, 1, 1)


@functools.partial(jax.jit,
                   static_argnames=("denom", "block_rows", "target_block_bytes"))
def _interval_threshold_impl(d_pool, *, denom, block_rows, target_block_bytes):
    x = d_pool
    # Keep f32/bf16/f16 native (no wrapper-side upcast pass); anything else
    # (ints, f64) is cast to f32, matching the torch-f32 semantics.
    if x.dtype.itemsize > 4 or not jnp.issubdtype(x.dtype, jnp.floating):
        x = x.astype(jnp.float32)

    # Free row-major dim collapse to (rows, cols); no pad, no copy.
    if x.ndim == 0:
        x = x.reshape(1, 1)
    elif x.ndim == 1:
        x = x.reshape(1, x.shape[0])
    else:
        x = x.reshape(-1, x.shape[-1])
    R, C = x.shape
    itemsize = x.dtype.itemsize
    sub = {4: 8, 2: 16, 1: 32}.get(itemsize, 8)   # sublane granule per dtype

    # Row-tile selection: multiple of the sublane granule, block bytes near
    # target_block_bytes, and the last block always starts in-bounds.
    if R <= sub:
        tile_r = R                                # full-dim block (no OOB)
    else:
        cap = _round_down(R, sub)
        if block_rows is None:
            want = max(sub, target_block_bytes // max(C * itemsize, 1))
        else:
            want = max(sub, block_rows)
        tile_r = max(sub, min(_round_down(want, sub), cap))

    total_tiles = -(-R // tile_r)
    # Two parallel slices -> both v7x TensorCores stream half the rows each;
    # on single-TC v5e/v6e this is just two back-to-back reductions (free).
    num_slices = 2 if total_tiles >= 2 else 1
    tiles_per_slice = -(-total_tiles // num_slices)
    phantom = num_slices * tiles_per_slice != total_tiles
    needs_mask = (R % tile_r != 0) or phantom

    if phantom:
        # Clamp phantom block indices to the last real block; its rows are
        # fully masked in-kernel (and max/min are idempotent anyway).
        def in_map(p, s):
            return (jnp.minimum(p * tiles_per_slice + s, total_tiles - 1), 0)
    else:
        def in_map(p, s):
            return (p * tiles_per_slice + s, 0)

    kernel = functools.partial(
        _minmax_partial_kernel,
        rows_total=R,
        tiles_per_slice=tiles_per_slice,
        needs_mask=needs_mask,
    )

    pmax, pmin = pl.pallas_call(
        kernel,
        grid=(num_slices, tiles_per_slice),
        in_specs=[pl.BlockSpec((tile_r, C), in_map)],
        out_specs=[pl.BlockSpec((1, 1, 1), lambda p, s: (p, 0, 0)),
                   pl.BlockSpec((1, 1, 1), lambda p, s: (p, 0, 0))],
        out_shape=[jax.ShapeDtypeStruct((num_slices, 1, 1), jnp.float32),
                   jax.ShapeDtypeStruct((num_slices, 1, 1), jnp.float32)],
        scratch_shapes=[pltpu.VMEM((8, C), jnp.float32),   # running max
                        pltpu.VMEM((8, C), jnp.float32)],  # running min
        compiler_params=pltpu.CompilerParams(
            # slice axis is independent (megacore); reduction axis is sequential
            dimension_semantics=("parallel", "arbitrary"),
            # explicit scoped-VMEM limit: safe on v5e/v6e (128 MiB physical)
            # and on v7x (64 MiB physical); leaves room for multi-MiB blocks
            # double-buffered.
            vmem_limit_bytes=32 * 1024 * 1024,
        ),
    )(x)

    # Trivial O(num_slices) combine + static divide (endorsed follow-up op).
    return (jnp.max(pmax) - jnp.min(pmin)) / denom


def interval_threshold(d_pool, m, n, *, target_block_bytes=4 * 1024 * 1024,
                       block_rows=None):
    """Pallas implementation of IntervalThreshold(m, n).forward(d_pool).

    target_block_bytes: per-block HBM->VMEM streaming size.  Suggested tuning:
    ~2-4 MiB (v5e), 4-8 MiB (v6e), 8-16 MiB (v7x).  Default 4 MiB is safe on
    every generation with the 32 MiB VMEM limit set above.
    """
    denom = float(min(m, n))   # static Python constant, like the torch module
    return _interval_threshold_impl(
        d_pool, denom=denom, block_rows=block_rows,
        target_block_bytes=target_block_bytes)


def _reference(d_pool, m, n):
    a = np.asarray(jax.device_get(d_pool)).astype(np.float64)
    return (a.max() - a.min()) / min(m, n)


if __name__ == "__main__":
    key = jax.random.PRNGKey(0)
    k0, k1, k2 = jax.random.split(key, 3)

    # (1) Small, module-consistent case: IntervalThreshold(8, 16) on a
    #     [1, m, n] pooled depth map.
    m0, n0 = 8, 16
    d0 = jax.random.normal(k0, (1, m0, n0), dtype=jnp.float32)
    t0 = jax.block_until_ready(interval_threshold(d0, m0, n0))
    np.testing.assert_allclose(np.asarray(t0), _reference(d0, m0, n0),
                               rtol=1e-6, atol=1e-6)

    # (2) Ragged shape: exercises in-kernel last-block row masking and the
    #     2-slice parallel split.
    m1, n1 = 37, 53
    d1 = jax.random.normal(k1, (1, m1, n1), dtype=jnp.float32)
    t1 = jax.block_until_ready(interval_threshold(d1, m1, n1))
    np.testing.assert_allclose(np.asarray(t1), _reference(d1, m1, n1),
                               rtol=1e-6, atol=1e-6)

    # (3) bf16 native streaming with forced small row tiles: multi-step
    #     accumulation, odd tile count (phantom-block clamp path) and the
    #     in-kernel f32 cast.
    m2, n2 = 129, 200
    d2 = jax.random.normal(k2, (4, m2, n2), dtype=jnp.float32).astype(jnp.bfloat16)
    t2 = jax.block_until_ready(interval_threshold(d2, m2, n2, block_rows=176))
    np.testing.assert_allclose(np.asarray(t2), _reference(d2, m2, n2),
                               rtol=1e-6, atol=1e-6)

    print("KERNEL_OK")
</pallas_src>

<mosaic_0001>
module attributes {stable_mosaic.version = 11 : i64} {
  func.func @_minmax_partial_kernel(%arg0: i32, %arg1: i32, %arg2: memref<8x16xf32, #tpu.memory_space<vmem>>, %arg3: memref<1x1x1xf32, #tpu.memory_space<vmem>>, %arg4: memref<1x1x1xf32, #tpu.memory_space<vmem>>, %arg5: memref<8x16xf32, #tpu.memory_space<vmem>>, %arg6: memref<8x16xf32, #tpu.memory_space<vmem>>) attributes {dimension_semantics = [#tpu.dimension_semantics<parallel>, #tpu.dimension_semantics<arbitrary>], iteration_bounds = array<i64: 1, 1>, scalar_prefetch = 0 : i64, scratch_operands = 2 : i64, tpu.core_type = #tpu.core_type<tc>, window_params = [{transform_indices = @transform_0, window_bounds = array<i64: 8, 16>}, {transform_indices = @transform_1, window_bounds = array<i64: 1, 1, 1>}, {transform_indices = @transform_2, window_bounds = array<i64: 1, 1, 1>}]} {
    %c0_i32 = arith.constant 0 : i32
    %0 = arith.cmpi eq, %arg1, %c0_i32 : i32
    %1 = arith.extui %0 : i1 to i32
    %c0_i32_0 = arith.constant 0 : i32
    %2 = arith.cmpi ne, %1, %c0_i32_0 : i32
    scf.if %2 {
      %cst_13 = arith.constant 0xFF800000 : f32
      %17 = vector.broadcast %cst_13 : f32 to vector<8x16xf32>
      %c0_14 = arith.constant 0 : index
      %c0_15 = arith.constant 0 : index
      %18 = vector.load %arg5[%c0_14, %c0_15] : memref<8x16xf32, #tpu.memory_space<vmem>>, vector<8x16xf32>
      tpu.vector_store %arg5[%c0_14, %c0_15], %17 {strides = array<i32>} : memref<8x16xf32, #tpu.memory_space<vmem>>, vector<8x16xf32>,
      %cst_16 = arith.constant 0x7F800000 : f32
      %19 = vector.broadcast %cst_16 : f32 to vector<8x16xf32>
      %c0_17 = arith.constant 0 : index
      %c0_18 = arith.constant 0 : index
      %20 = vector.load %arg6[%c0_17, %c0_18] : memref<8x16xf32, #tpu.memory_space<vmem>>, vector<8x16xf32>
      tpu.vector_store %arg6[%c0_17, %c0_18], %19 {strides = array<i32>} : memref<8x16xf32, #tpu.memory_space<vmem>>, vector<8x16xf32>,
    } else {
    }
    %c0 = arith.constant 0 : index
    %c0_1 = arith.constant 0 : index
    %3 = vector.load %arg2[%c0, %c0_1] : memref<8x16xf32, #tpu.memory_space<vmem>>, vector<8x16xf32>
    %4 = vector.shape_cast %3 : vector<8x16xf32> to vector<1x8x16xf32>
    %5 = vector.shape_cast %3 : vector<8x16xf32> to vector<1x8x16xf32>
    %cst = arith.constant dense<0xFF800000> : vector<8x16xf32>
    %6 = vector.multi_reduction <maximumf>, %4, %cst [0] : vector<1x8x16xf32> to vector<8x16xf32>
    %cst_2 = arith.constant dense<0x7F800000> : vector<8x16xf32>
    %7 = vector.multi_reduction <minimumf>, %5, %cst_2 [0] : vector<1x8x16xf32> to vector<8x16xf32>
    %c0_3 = arith.constant 0 : index
    %c0_4 = arith.constant 0 : index
    %8 = vector.load %arg5[%c0_3, %c0_4] : memref<8x16xf32, #tpu.memory_space<vmem>>, vector<8x16xf32>
    %9 = arith.maximumf %8, %6 : vector<8x16xf32>
    %c0_5 = arith.constant 0 : index
    %c0_6 = arith.constant 0 : index
    %10 = vector.load %arg5[%c0_5, %c0_6] : memref<8x16xf32, #tpu.memory_space<vmem>>, vector<8x16xf32>
    tpu.vector_store %arg5[%c0_5, %c0_6], %9 {strides = array<i32>} : memref<8x16xf32, #tpu.memory_space<vmem>>, vector<8x16xf32>,
    %c0_7 = arith.constant 0 : index
    %c0_8 = arith.constant 0 : index
    %11 = vector.load %arg6[%c0_7, %c0_8] : memref<8x16xf32, #tpu.memory_space<vmem>>, vector<8x16xf32>
    %12 = arith.minimumf %11, %7 : vector<8x16xf32>
    %c0_9 = arith.constant 0 : index
    %c0_10 = arith.constant 0 : index
    %13 = vector.load %arg6[%c0_9, %c0_10] : memref<8x16xf32, #tpu.memory_space<vmem>>, vector<8x16xf32>
    tpu.vector_store %arg6[%c0_9, %c0_10], %12 {strides = array<i32>} : memref<8x16xf32, #tpu.memory_space<vmem>>, vector<8x16xf32>,
    %c0_i32_11 = arith.constant 0 : i32
    %14 = arith.cmpi eq, %arg1, %c0_i32_11 : i32
    %15 = arith.extui %14 : i1 to i32
    %c0_i32_12 = arith.constant 0 : i32
    %16 = arith.cmpi ne, %15, %c0_i32_12 : i32
    scf.if %16 {
      %c0_13 = arith.constant 0 : index
      %c0_14 = arith.constant 0 : index
      %17 = vector.load %arg5[%c0_13, %c0_14] : memref<8x16xf32, #tpu.memory_space<vmem>>, vector<8x16xf32>
      %cst_15 = arith.constant dense<0xFF800000> : vector<8xf32>
      %18 = vector.multi_reduction <maximumf>, %17, %cst_15 [1] : vector<8x16xf32> to vector<8xf32>
      %19 = vector.shape_cast %18 : vector<8xf32> to vector<8x1xf32>
      %cst_16 = arith.constant dense<0xFF800000> : vector<1xf32>
      %20 = vector.multi_reduction <maximumf>, %19, %cst_16 [0] : vector<8x1xf32> to vector<1xf32>
      %21 = vector.shape_cast %20 : vector<1xf32> to vector<1x1xf32>
      %c0_17 = arith.constant 0 : index
      %c0_18 = arith.constant 0 : index
      %22 = vector.load %arg6[%c0_17, %c0_18] : memref<8x16xf32, #tpu.memory_space<vmem>>, vector<8x16xf32>
      %cst_19 = arith.constant dense<0x7F800000> : vector<8xf32>
      %23 = vector.multi_reduction <minimumf>, %22, %cst_19 [1] : vector<8x16xf32> to vector<8xf32>
      %24 = vector.shape_cast %23 : vector<8xf32> to vector<8x1xf32>
      %cst_20 = arith.constant dense<0x7F800000> : vector<1xf32>
      %25 = vector.multi_reduction <minimumf>, %24, %cst_20 [0] : vector<8x1xf32> to vector<1xf32>
      %26 = vector.shape_cast %25 : vector<1xf32> to vector<1x1xf32>
      %27 = vector.shape_cast %21 : vector<1x1xf32> to vector<1x1x1xf32>
      %c0_21 = arith.constant 0 : index
      %c0_22 = arith.constant 0 : index
      %c0_23 = arith.constant 0 : index
      %28 = vector.load %arg3[%c0_21, %c0_22, %c0_23] : memref<1x1x1xf32, #tpu.memory_space<vmem>>, vector<1x1x1xf32>
      tpu.vector_store %arg3[%c0_21, %c0_22, %c0_23], %27 {strides = array<i32>} : memref<1x1x1xf32, #tpu.memory_space<vmem>>, vector<1x1x1xf32>,
      %29 = vector.shape_cast %26 : vector<1x1xf32> to vector<1x1x1xf32>
      %c0_24 = arith.constant 0 : index
      %c0_25 = arith.constant 0 : index
      %c0_26 = arith.constant 0 : index
      %30 = vector.load %arg4[%c0_24, %c0_25, %c0_26] : memref<1x1x1xf32, #tpu.memory_space<vmem>>, vector<1x1x1xf32>
      tpu.vector_store %arg4[%c0_24, %c0_25, %c0_26], %29 {strides = array<i32>} : memref<1x1x1xf32, #tpu.memory_space<vmem>>, vector<1x1x1xf32>,
    } else {
    }
    return
  }
  func.func @transform_0(%arg0: i32, %arg1: i32) -> (i32, i32) {
    %c1_i32 = arith.constant 1 : i32
    %0 = arith.muli %arg0, %c1_i32 : i32
    %1 = arith.addi %0, %arg1 : i32
    %c0_i32 = arith.constant 0 : i32
    %c0_i32_0 = arith.constant 0 : i32
    return %1, %c0_i32 : i32, i32
  }
  func.func @transform_1(%arg0: i32, %arg1: i32) -> (i32, i32, i32) {
    %c0_i32 = arith.constant 0 : i32
    %c0_i32_0 = arith.constant 0 : i32
    %c0_i32_1 = arith.constant 0 : i32
    return %arg0, %c0_i32, %c0_i32_0 : i32, i32, i32
  }
  func.func @transform_2(%arg0: i32, %arg1: i32) -> (i32, i32, i32) {
    %c0_i32 = arith.constant 0 : i32
    %c0_i32_0 = arith.constant 0 : i32
    %c0_i32_1 = arith.constant 0 : i32
    return %arg0, %c0_i32, %c0_i32_0 : i32, i32, i32
  }
}

</mosaic_0001>

<bundles_post_ra>
// kernel: _interval_threshold_impl.1
= control target key start
LH: loop header
LB: loop body
LE: loop exit
PB: predicated region body
PF: predicated region fallthrough
CT: control target
= control target key end

     0   :  { %8 = vsyncpa [#allocation5], 0  ;;  %s239_s0 = inlined_call_operand.hbm [shape: f32[8,16], index: 0, kind: input, shape index: {}]   ;;  %s240_s1 = inlined_call_operand.hbm [shape: f32[1,1,1], index: 1, kind: output, shape index: {0}]   ;;  %s241_s2 = inlined_call_operand.hbm [shape: f32[1,1,1], index: 2, kind: output, shape index: {1}]  }
   0x1   :  { %9 = vsyncpa [#allocation6], 0 }
   0x2   :  { %10 = vsyncpa [#allocation9], 0  ;;  %s175_s9 = smov [#allocation4]   ;;  %s103_s13 = scalar_lea.hbm %s239_s0, 128 }
   0x3   :  { %s20_s10 = sshll.u32 %s175_s9, 4  ;;  %p104_p0 = scmp.ne.s32.totalorder %s239_s0, %s103_s13  ;;  %s21_s10 = int_to_ptr.vmem [resolvable:$true] %s20_s10 }
   0x4   :  { %p107_p1 = scmp.lt.u32.totalorder %s103_s13, %s239_s0 }
   0x6   :  { %p109_p2 = pnand %p107_p1, %p104_p0 }
   0x8   :  { %112 = shalt.err (!%p109_p2)
}
   0x9   :  { %s113_s18 = scalar_lea.vmem %s21_s10, 128  ;;  %p118_p4 = scmp.lt.s32.totalorder %s21_s10, %s21_s10 }
   0xa   :  { %p114_p3 = scmp.ne.s32.totalorder %s21_s10, %s113_s18  ;;  %p119_p5 = scmp.lt.s32.totalorder %s113_s18, %s113_s18 }
   0xc   :  { %p120_p6 = por %p119_p5, %p118_p4 }
   0xe   :  { %p121_p7 = pnand %p120_p6, %p114_p3 }
  0x10   :  { %124 = shalt.err (!%p121_p7)
}
  0x11   :  { %23 = dma.hbm_to_vmem [thread:$0]  %s239_s0, 128, %s21_s10, [#allocation5]  }
  0x12   :  { %169 = dma.done.wait [#allocation5], 128  }
  0x13   :  { %170 = vsyncadd [#allocation5], 4294967168  ;;  %vm32_vm0 = vcmask 130048   ;;  %v176_v0 = vmov -inf   ;;  %v177_v1 = vmov inf   ;;  %v35_v2 = vld [vmem:[#allocation4] sm:$0xff] }
  0x14   :  { %33 = vst.msk [vmem:[#allocation2] sm:$0xff] %vm32_vm0, %v176_v0  ;;  %34 = vst.msk [vmem:[#allocation3] sm:$0xff] %vm32_vm0, %v177_v1  ;;  %s178_s0 = smov [#allocation7]   ;;  %vm66_vm1 = vcmask 0   ;;  %s179_s22 = smov [#allocation8]  }
  0x15   :  { %s75_s21 = sshll.u32 %s178_s0, 4  ;;  %s85_s23 = sshll.u32 %s179_s22, 4  ;;  %s76_s21 = int_to_ptr.vmem [resolvable:$true] %s75_s21  ;;  %s86_s23 = int_to_ptr.vmem [resolvable:$true] %s85_s23 }
  0x16   :  { %s125_s24 = scalar_lea.vmem %s76_s21, 16  ;;  %s129_s25 = scalar_lea.vmem %s76_s21, 32 }
  0x17   :  { %p126_p8 = scmp.ne.s32.totalorder %s76_s21, %s125_s24  ;;  %p130_p9 = scmp.lt.s32.totalorder %s76_s21, %s76_s21 }
  0x18   :  { %p131_p10 = scmp.lt.s32.totalorder %s129_s25, %s125_s24 }
  0x1a   :  { %p132_p11 = por %p131_p10, %p130_p9 }
  0x1b   :  { %v36_v3 = vld [vmem:[#allocation2] sm:$0xff]  ;;  %v40_v4 = vld [vmem:[#allocation3] sm:$0xff] }
  0x1c   :  { %v37_v5 = vmax.f32 %v36_v3, %v35_v2  ;;  %v41_v6 = vmin.f32 %v40_v4, %v35_v2  ;;  %p133_p12 = pnand %p132_p11, %p126_p8 }
  0x1e   :  { %39 = vst.msk [vmem:[#allocation2] sm:$0xff] %vm32_vm0, %v37_v5  ;;  %42 = vst.msk [vmem:[#allocation3] sm:$0xff] %vm32_vm0, %v41_v6 }
  0x25   :  { %v46_v7 = vld [vmem:[#allocation2] sm:$0xff]  ;;  %v56_v8 = vld [vmem:[#allocation3] sm:$0xff] }
  0x26   :  { %v47_v9 = vsel %vm32_vm0, %v46_v7, -inf  ;;  %v57_v10 = vsel %vm32_vm0, %v56_v8, inf }
  0x27   :  { %48 = vmax.xlane.f32.xlu0 %v47_v9 }
  0x2b   :  { %58 = vmin.xlane.f32.xlu0 %v57_v10 }
  0xb4   :  { %v49_v11 = vpop.xlane.xlu0 %48 }
  0xb5   :  { %v50_v12 = vrot.slane %v49_v11, 4 }
  0xb7   :  { %v51_v13 = vmax.f32 %v49_v11, %v50_v12 }
  0xb8   :  { %v59_v14 = vpop.xlane.xlu0 %58 }
  0xb9   :  { %v52_v15 = vrot.slane %v51_v13, 2  ;;  %v60_v16 = vrot.slane %v59_v14, 4 }
  0xbb   :  { %v53_v17 = vmax.f32 %v51_v13, %v52_v15  ;;  %v61_v18 = vmin.f32 %v59_v14, %v60_v16 }
  0xbd   :  { %v54_v19 = vrot.slane %v53_v17, 1  ;;  %v62_v20 = vrot.slane %v61_v18, 2 }
  0xbf   :  { %v55_v21 = vmax.f32 %v53_v17, %v54_v19  ;;  %v63_v22 = vmin.f32 %v61_v18, %v62_v20 }
  0xc1   :  { %v64_v23 = vrot.slane %v63_v22, 1  ;;  %67 = vst.msk [vmem:[#allocation7] sm:$0x1] %vm66_vm1, %v55_v21 }
  0xc2   :  { %136 = shalt.err (!%p133_p12)
}
  0xc3   :  { %s137_s28 = scalar_lea.hbm %s240_s1, 16 }
  0xc4   :  { %p138_p13 = scmp.ne.s32.totalorder %s240_s1, %s137_s28  ;;  %p141_p0 = scmp.lt.u32.totalorder %s137_s28, %s240_s1 }
  0xc6   :  { %p143_p1 = pnand %p141_p0, %p138_p13 }
  0xc8   :  { %146 = shalt.err (!%p143_p1)
}
  0xc9   :  { %78 = dma.vmem_to_hbm [thread:$0]  %s76_s21, 16, %s240_s1, [#allocation6]   ;;  %v65_v24 = vmin.f32 %v63_v22, %v64_v23 }
  0xca   :  { %s147_s7 = scalar_lea.vmem %s86_s23, 16  ;;  %s151_s8 = scalar_lea.vmem %s86_s23, 32 }
  0xcb   :  { %68 = vst.msk [vmem:[#allocation8] sm:$0x1] %vm66_vm1, %v65_v24  ;;  %p148_p2 = scmp.ne.s32.totalorder %s86_s23, %s147_s7  ;;  %p152_p3 = scmp.lt.s32.totalorder %s86_s23, %s86_s23 }
  0xcc   :  { %p153_p4 = scmp.lt.s32.totalorder %s151_s8, %s147_s7 }
  0xce   :  { %p154_p5 = por %p153_p4, %p152_p3 }
  0xd0   :  { %p155_p6 = pnand %p154_p5, %p148_p2 }
  0xd2   :  { %158 = shalt.err (!%p155_p6)
}
  0xd3   :  { %s159_s11 = scalar_lea.hbm %s241_s2, 16 }
  0xd4   :  { %p160_p7 = scmp.ne.s32.totalorder %s241_s2, %s159_s11  ;;  %p163_p8 = scmp.lt.u32.totalorder %s159_s11, %s241_s2 }
  0xd6   :  { %p165_p9 = pnand %p163_p8, %p160_p7 }
  0xd8   :  { %168 = shalt.err (!%p165_p9)
}
  0xd9   :  { %88 = dma.vmem_to_hbm [thread:$0]  %s86_s23, 16, %s241_s2, [#allocation9]  }
  0xda   :  { %171 = dma.done.wait [#allocation6], 16  }
  0xdb   :  { %172 = vsyncadd [#allocation6], 4294967280 }
  0xdc   :  { %173 = dma.done.wait [#allocation9], 16  }
  0xdd   :  { %174 = vsyncadd [#allocation9], 4294967280 }
  0xde   :  { %95 = vsyncpa [#allocation5], 1 }
  0xdf   :  { %96 = vsyncpa [#allocation6], 1 }
  0xe0   :  { %97 = vsyncpa [#allocation9], 1 }

</bundles_post_ra>
